<compile_context>
chip_gen: v7x
topology: tpu7x:2x2x1
jax: 0.10.0
libtpu: 0.0.40
codegen_flags: <defaults>
</compile_context>

<pallas_src>
import functools

import jax
import jax.numpy as jnp
from jax.experimental import pallas as pl
from jax.experimental.pallas import tpu as pltpu


def _round_up(n, m):
    return ((n + m - 1) // m) * m


def _pad2(a, rows, cols):
    r, c = a.shape
    if r == rows and c == cols:
        return a
    return jnp.pad(a, ((0, rows - r), (0, cols - c)))


# ---------------------------------------------------------------------------
# Static chip detection (trace-time, no per-call cost).
# ---------------------------------------------------------------------------

def _device_kind():
    try:
        return jax.devices()[0].device_kind.lower()
    except Exception:
        return ""


def _vmem_capacity_bytes(kind):
    try:
        return int(pltpu.get_tpu_info().vmem_capacity_bytes)
    except Exception:
        # v7x: 64 MiB per TensorCore; v5e/v6e: 128 MiB.
        return (64 << 20) if "7" in kind else (128 << 20)


def _chip_config():
    kind = _device_kind()
    phys_vmem = _vmem_capacity_bytes(kind)
    is_v7x = ("7" in kind) or (phys_vmem <= (64 << 20))
    is_v6e = "v6" in kind
    # bf16 VALUs exist on v6e/v7x; v5e (and unknown) keep the f32 epilogue.
    bf16_epilogue = bool(is_v6e or is_v7x)
    # 2x256x256 MXU on v6e/v7x -> align large matmul dims to 256; 128 on v5e.
    mxu_align = 256 if (is_v6e or is_v7x) else 128
    if phys_vmem <= (64 << 20):
        vmem_cap = phys_vmem - (12 << 20)                     # ~52 MiB on v7x
    else:
        vmem_cap = min(phys_vmem - (28 << 20), 100 << 20)     # ~100 MiB v5e/v6e
    return dict(kind=kind, phys_vmem=phys_vmem, is_v7x=is_v7x,
                bf16_epilogue=bf16_epilogue, mxu_align=mxu_align,
                vmem_cap=vmem_cap)


def _pad_dim(d, align):
    # 128-alignment for lane-dense stores; 256 only when the dim is big enough
    # that the extra padding is not wasted FLOPs.
    base = _round_up(d, 128)
    if align > 128 and d >= align:
        return _round_up(d, align)
    return base


# ---------------------------------------------------------------------------
# Kernel
# ---------------------------------------------------------------------------

def _residual_text_kernel(x_ref, w1_ref, b1_ref, w2_ref, b2_ref,
                          w3_ref, b3_ref, out_ref, *, bf16_epilogue):
    cdt = w1_ref.dtype
    # x arrives as f32 straight from HBM; cast to the MXU dtype in-kernel.
    x = x_ref[...].astype(cdt)                                   # (TM, Dp)

    # fc1 + bias + ReLU (f32 accumulate)
    a1 = jnp.dot(x, w1_ref[...], preferred_element_type=jnp.float32)
    h1_f32 = jnp.maximum(a1 + b1_ref[...], 0.0)                  # (TM, Hp) f32
    h1 = h1_f32.astype(cdt)                                      # fc2 operand / residual

    # dropout -> identity (eval mode); residual captured pre-fc2.
    a2 = jnp.dot(h1, w2_ref[...], preferred_element_type=jnp.float32)
    h2_f32 = jnp.maximum(a2 + b2_ref[...], 0.0)                  # (TM, Hp) f32

    # dropout -> identity, then residual add.
    if bf16_epilogue:
        h = h2_f32.astype(cdt) + h1                              # bf16 VALUs (v6e/v7x)
    else:
        h = (h2_f32 + h1_f32).astype(cdt)                        # f32 epilogue (v5e)

    # fc3 -> logits
    logits = jnp.dot(h, w3_ref[...], preferred_element_type=jnp.float32)
    out_ref[...] = (logits + b3_ref[...]).astype(out_ref.dtype)


# ---------------------------------------------------------------------------
# Wrapper
# ---------------------------------------------------------------------------

def prepare_params(params, *, compute_dtype=jnp.bfloat16, chip=None):
    """Pad + cast the weights ONCE (cache the result; no per-call repacking)."""
    chip = chip or _chip_config()
    w1, b1, w2, b2, w3, b3 = params
    D, H = w1.shape
    C = w3.shape[1]
    align = chip["mxu_align"]
    Dp, Hp, Cp = _pad_dim(D, align), _pad_dim(H, align), _pad_dim(C, align)
    cdt = jnp.dtype(compute_dtype)

    w1p = _pad2(w1, Dp, Hp).astype(cdt)
    w2p = _pad2(w2, Hp, Hp).astype(cdt)
    w3p = _pad2(w3, Hp, Cp).astype(cdt)
    # Biases stay f32: the bias add happens on the f32 accumulator.
    b1p = _pad2(b1.reshape(1, -1), 1, Hp).astype(jnp.float32)
    b2p = _pad2(b2.reshape(1, -1), 1, Hp).astype(jnp.float32)
    b3p = _pad2(b3.reshape(1, -1), 1, Cp).astype(jnp.float32)

    meta = dict(D=D, H=H, C=C, Dp=Dp, Hp=Hp, Cp=Cp, compute_dtype=cdt, chip=chip)
    return (w1p, b1p, w2p, b2p, w3p, b3p), meta


def _choose_tm(B, Dp, Hp, Cp, weight_bytes, vmem_cap, out_itemsize):
    if B <= 128:
        # Small batch: shrink the tile (16 = bf16 sublane minimum, 8 ok for f32)
        # instead of padding B up to 128 and doing 16x wasted matmul work.
        return _round_up(max(B, 8), 16)

    def tile_bytes(tm):
        return (2 * tm * Dp * 4                  # streamed f32 x tiles (2-deep)
                + 2 * tm * Cp * out_itemsize     # streamed out tiles (2-deep)
                + 4 * tm * Hp * 4)               # live f32 activations

    for tm in (512, 256, 128):
        if tm > B:
            continue
        fits = weight_bytes + tile_bytes(tm) + (8 << 20) <= vmem_cap
        if fits and pl.cdiv(B, tm) >= 2:         # keep >=2 grid steps for megacore
            return tm
    return 128


def residual_text_forward(x, prepared, *, out_dtype=jnp.float32):
    """Fused forward. x: (B, text_dim) f32 -> (B, num_classes) out_dtype."""
    (w1p, b1p, w2p, b2p, w3p, b3p), meta = prepared
    chip = meta["chip"]
    cdt = meta["compute_dtype"]
    C = meta["C"]
    Dp, Hp, Cp = meta["Dp"], meta["Hp"], meta["Cp"]
    B, D = x.shape
    assert D == meta["D"], "input feature dim mismatch with prepared params"
    out_itemsize = jnp.dtype(out_dtype).itemsize
    x = x.astype(jnp.float32)

    # Single-buffered resident weights + f32 biases.
    weight_bytes = ((Dp * Hp + Hp * Hp + Hp * Cp) * cdt.itemsize
                    + (2 * Hp + Cp) * 4)
    vmem_cap = chip["vmem_cap"]
    if weight_bytes + (4 << 20) > vmem_cap:
        # TODO(synk): weight-streaming fallback (K/N grid axis + f32 accumulator
        # scratch) for resident weights exceeding the per-core VMEM cap (v7x,
        # hidden_dim >~ 4-5k) is not implemented.
        raise ValueError("resident weights exceed the per-core VMEM budget")

    TM = _choose_tm(B, Dp, Hp, Cp, weight_bytes, vmem_cap, out_itemsize)
    Bp = _round_up(B, TM)
    num_m = Bp // TM

    # x stays f32; pad only if shapes require it (no-op when already aligned).
    # The bf16 cast happens inside the kernel -> no extra HBM round trip.
    xp = _pad2(x, Bp, Dp)

    cost = pl.CostEstimate(
        flops=2 * Bp * (Dp * Hp + Hp * Hp + Hp * Cp),
        transcendentals=0,
        bytes_accessed=(Bp * Dp * 4 + weight_bytes + Bp * Cp * out_itemsize),
    )

    kernel = functools.partial(_residual_text_kernel,
                               bf16_epilogue=chip["bf16_epilogue"])

    def _make_call(single_buffer_weights):
        if single_buffer_weights:
            resident = lambda shape: pl.BlockSpec(
                shape, lambda i: (0, 0), pipeline_mode=pl.Buffered(1))
            w_bufs = 1
        else:
            resident = lambda shape: pl.BlockSpec(shape, lambda i: (0, 0))
            w_bufs = 2

        est = (w_bufs * weight_bytes
               + 2 * TM * Dp * 4
               + 2 * TM * Cp * out_itemsize
               + 4 * TM * Hp * 4
               + (8 << 20))
        vmem_bytes = int(min(max(est, 32 << 20), vmem_cap))

        return pl.pallas_call(
            kernel,
            out_shape=jax.ShapeDtypeStruct((Bp, Cp), out_dtype),
            grid=(num_m,),
            in_specs=[
                pl.BlockSpec((TM, Dp), lambda i: (i, 0)),   # x tile (streamed)
                resident((Dp, Hp)),                          # w1 (VMEM-resident)
                resident((1, Hp)),                           # b1
                resident((Hp, Hp)),                          # w2
                resident((1, Hp)),                           # b2
                resident((Hp, Cp)),                          # w3
                resident((1, Cp)),                           # b3
            ],
            out_specs=pl.BlockSpec((TM, Cp), lambda i: (i, 0)),
            compiler_params=pltpu.CompilerParams(
                dimension_semantics=("parallel",),
                vmem_limit_bytes=vmem_bytes,
            ),
            cost_estimate=cost,
        )

    args = (xp, w1p, b1p, w2p, b2p, w3p, b3p)
    try:
        out_padded = _make_call(True)(*args)
    except Exception:
        # Fallback for JAX versions without pipeline_mode support on BlockSpec.
        out_padded = _make_call(False)(*args)

    return out_padded[:B, :C]


# ---------------------------------------------------------------------------
# Params / reference
# ---------------------------------------------------------------------------

def init_params(key, text_dim, hidden_dim, num_classes):
    """Deterministic init mimicking nn.Linear (uniform +-1/sqrt(fan_in)).

    Weights are stored transposed relative to PyTorch, i.e. (in_dim, out_dim),
    so the kernel computes y = x @ W + b directly on the MXU.
    """
    def linear(k, fan_in, fan_out):
        kw, kb = jax.random.split(k)
        bound = 1.0 / jnp.sqrt(fan_in)
        w = jax.random.uniform(kw, (fan_in, fan_out), jnp.float32,
                               minval=-bound, maxval=bound)
        b = jax.random.uniform(kb, (1, fan_out), jnp.float32,
                               minval=-bound, maxval=bound)
        return w, b

    k1, k2, k3 = jax.random.split(key, 3)
    w1, b1 = linear(k1, text_dim, hidden_dim)
    w2, b2 = linear(k2, hidden_dim, hidden_dim)
    w3, b3 = linear(k3, hidden_dim, num_classes)
    return (w1, b1, w2, b2, w3, b3)


def _reference(x, params):
    """Pure-JAX f32 reference matching the PyTorch forward (eval mode)."""
    w1, b1, w2, b2, w3, b3 = params
    h1 = jnp.maximum(x @ w1 + b1, 0.0)
    h2 = jnp.maximum(h1 @ w2 + b2, 0.0)
    h = h2 + h1
    return h @ w3 + b3


if __name__ == "__main__":
    key = jax.random.PRNGKey(0)
    kx, kp = jax.random.split(key)

    batch, text_dim, hidden_dim, num_classes = 8, 32, 32, 8

    x = jax.random.normal(kx, (batch, text_dim), jnp.float32)
    params = init_params(kp, text_dim, hidden_dim, num_classes)

    prepared = prepare_params(params)              # pad/cast weights once
    out = residual_text_forward(x, prepared)
    out = jax.block_until_ready(out)

    ref = _reference(x, params)
    assert out.shape == (batch, num_classes)
    # bf16 matmul operands -> loose tolerance vs the f32 reference.
    assert jnp.allclose(out, ref, atol=1e-1, rtol=1e-1), "mismatch vs reference"

    print("KERNEL_OK")
</pallas_src>

<mosaic_0001>
module attributes {stable_mosaic.version = 11 : i64} {
  func.func @_residual_text_kernel(%arg0: i32, %arg1: memref<16x128xf32, #tpu.memory_space<vmem>>, %arg2: memref<128x128xbf16, #tpu.memory_space<vmem>>, %arg3: memref<1x128xf32, #tpu.memory_space<vmem>>, %arg4: memref<128x128xbf16, #tpu.memory_space<vmem>>, %arg5: memref<1x128xf32, #tpu.memory_space<vmem>>, %arg6: memref<128x128xbf16, #tpu.memory_space<vmem>>, %arg7: memref<1x128xf32, #tpu.memory_space<vmem>>, %arg8: memref<16x128xf32, #tpu.memory_space<vmem>>) attributes {dimension_semantics = [#tpu.dimension_semantics<parallel>], iteration_bounds = array<i64: 1>, scalar_prefetch = 0 : i64, scratch_operands = 0 : i64, tpu.core_type = #tpu.core_type<tc>, window_params = [{transform_indices = @transform_0, window_bounds = array<i64: 16, 128>}, {pipeline_mode = #tpu.pipeline_mode<synchronous>, transform_indices = @transform_1, window_bounds = array<i64: 128, 128>}, {pipeline_mode = #tpu.pipeline_mode<synchronous>, transform_indices = @transform_2, window_bounds = array<i64: 1, 128>}, {pipeline_mode = #tpu.pipeline_mode<synchronous>, transform_indices = @transform_3, window_bounds = array<i64: 128, 128>}, {pipeline_mode = #tpu.pipeline_mode<synchronous>, transform_indices = @transform_4, window_bounds = array<i64: 1, 128>}, {pipeline_mode = #tpu.pipeline_mode<synchronous>, transform_indices = @transform_5, window_bounds = array<i64: 128, 128>}, {pipeline_mode = #tpu.pipeline_mode<synchronous>, transform_indices = @transform_6, window_bounds = array<i64: 1, 128>}, {transform_indices = @transform_7, window_bounds = array<i64: 16, 128>}]} {
    %c0 = arith.constant 0 : index
    %c0_0 = arith.constant 0 : index
    %0 = vector.load %arg1[%c0, %c0_0] : memref<16x128xf32, #tpu.memory_space<vmem>>, vector<16x128xf32>
    %1 = arith.truncf %0 : vector<16x128xf32> to vector<16x128xbf16>
    %c0_1 = arith.constant 0 : index
    %c0_2 = arith.constant 0 : index
    %2 = vector.load %arg2[%c0_1, %c0_2] : memref<128x128xbf16, #tpu.memory_space<vmem>>, vector<128x128xbf16>
    %cst = arith.constant dense<0.000000e+00> : vector<16x128xf32>
    %3 = tpu.matmul %1, %2, %cst {dimension_numbers = #tpu.dot_dimension_numbers<[1], [0], [0], [1], [0, 0, 1, 1], [], []>} : vector<16x128xbf16>, vector<128x128xbf16>, vector<16x128xf32> -> vector<16x128xf32>
    %c0_3 = arith.constant 0 : index
    %c0_4 = arith.constant 0 : index
    %4 = vector.load %arg3[%c0_3, %c0_4] : memref<1x128xf32, #tpu.memory_space<vmem>>, vector<1x128xf32>
    %5 = vector.broadcast %4 : vector<1x128xf32> to vector<16x128xf32>
    %6 = arith.addf %3, %5 : vector<16x128xf32>
    %cst_5 = arith.constant 0.000000e+00 : f32
    %7 = vector.broadcast %cst_5 : f32 to vector<16x128xf32>
    %8 = arith.maximumf %6, %7 : vector<16x128xf32>
    %9 = arith.truncf %8 : vector<16x128xf32> to vector<16x128xbf16>
    %c0_6 = arith.constant 0 : index
    %c0_7 = arith.constant 0 : index
    %10 = vector.load %arg4[%c0_6, %c0_7] : memref<128x128xbf16, #tpu.memory_space<vmem>>, vector<128x128xbf16>
    %cst_8 = arith.constant dense<0.000000e+00> : vector<16x128xf32>
    %11 = tpu.matmul %9, %10, %cst_8 {dimension_numbers = #tpu.dot_dimension_numbers<[1], [0], [0], [1], [0, 0, 1, 1], [], []>} : vector<16x128xbf16>, vector<128x128xbf16>, vector<16x128xf32> -> vector<16x128xf32>
    %c0_9 = arith.constant 0 : index
    %c0_10 = arith.constant 0 : index
    %12 = vector.load %arg5[%c0_9, %c0_10] : memref<1x128xf32, #tpu.memory_space<vmem>>, vector<1x128xf32>
    %13 = vector.broadcast %12 : vector<1x128xf32> to vector<16x128xf32>
    %14 = arith.addf %11, %13 : vector<16x128xf32>
    %cst_11 = arith.constant 0.000000e+00 : f32
    %15 = vector.broadcast %cst_11 : f32 to vector<16x128xf32>
    %16 = arith.maximumf %14, %15 : vector<16x128xf32>
    %17 = arith.addf %16, %8 : vector<16x128xf32>
    %18 = arith.truncf %17 : vector<16x128xf32> to vector<16x128xbf16>
    %c0_12 = arith.constant 0 : index
    %c0_13 = arith.constant 0 : index
    %19 = vector.load %arg6[%c0_12, %c0_13] : memref<128x128xbf16, #tpu.memory_space<vmem>>, vector<128x128xbf16>
    %cst_14 = arith.constant dense<0.000000e+00> : vector<16x128xf32>
    %20 = tpu.matmul %18, %19, %cst_14 {dimension_numbers = #tpu.dot_dimension_numbers<[1], [0], [0], [1], [0, 0, 1, 1], [], []>} : vector<16x128xbf16>, vector<128x128xbf16>, vector<16x128xf32> -> vector<16x128xf32>
    %c0_15 = arith.constant 0 : index
    %c0_16 = arith.constant 0 : index
    %21 = vector.load %arg7[%c0_15, %c0_16] : memref<1x128xf32, #tpu.memory_space<vmem>>, vector<1x128xf32>
    %22 = vector.broadcast %21 : vector<1x128xf32> to vector<16x128xf32>
    %23 = arith.addf %20, %22 : vector<16x128xf32>
    %c0_17 = arith.constant 0 : index
    %c0_18 = arith.constant 0 : index
    %24 = vector.load %arg8[%c0_17, %c0_18] : memref<16x128xf32, #tpu.memory_space<vmem>>, vector<16x128xf32>
    tpu.vector_store %arg8[%c0_17, %c0_18], %23 {strides = array<i32>} : memref<16x128xf32, #tpu.memory_space<vmem>>, vector<16x128xf32>,
    return
  }
  func.func @transform_0(%arg0: i32) -> (i32, i32) {
    %c0_i32 = arith.constant 0 : i32
    %c0_i32_0 = arith.constant 0 : i32
    return %arg0, %c0_i32 : i32, i32
  }
  func.func @transform_1(%arg0: i32) -> (i32, i32) {
    %c0_i32 = arith.constant 0 : i32
    %c0_i32_0 = arith.constant 0 : i32
    %c0_i32_1 = arith.constant 0 : i32
    return %c0_i32, %c0_i32_0 : i32, i32
  }
  func.func @transform_2(%arg0: i32) -> (i32, i32) {
    %c0_i32 = arith.constant 0 : i32
    %c0_i32_0 = arith.constant 0 : i32
    %c0_i32_1 = arith.constant 0 : i32
    return %c0_i32, %c0_i32_0 : i32, i32
  }
  func.func @transform_3(%arg0: i32) -> (i32, i32) {
    %c0_i32 = arith.constant 0 : i32
    %c0_i32_0 = arith.constant 0 : i32
    %c0_i32_1 = arith.constant 0 : i32
    return %c0_i32, %c0_i32_0 : i32, i32
  }
  func.func @transform_4(%arg0: i32) -> (i32, i32) {
    %c0_i32 = arith.constant 0 : i32
    %c0_i32_0 = arith.constant 0 : i32
    %c0_i32_1 = arith.constant 0 : i32
    return %c0_i32, %c0_i32_0 : i32, i32
  }
  func.func @transform_5(%arg0: i32) -> (i32, i32) {
    %c0_i32 = arith.constant 0 : i32
    %c0_i32_0 = arith.constant 0 : i32
    %c0_i32_1 = arith.constant 0 : i32
    return %c0_i32, %c0_i32_0 : i32, i32
  }
  func.func @transform_6(%arg0: i32) -> (i32, i32) {
    %c0_i32 = arith.constant 0 : i32
    %c0_i32_0 = arith.constant 0 : i32
    %c0_i32_1 = arith.constant 0 : i32
    return %c0_i32, %c0_i32_0 : i32, i32
  }
  func.func @transform_7(%arg0: i32) -> (i32, i32) {
    %c0_i32 = arith.constant 0 : i32
    %c0_i32_0 = arith.constant 0 : i32
    return %arg0, %c0_i32 : i32, i32
  }
}

module attributes {stable_mosaic.version = 11 : i64} {
  func.func @_residual_text_kernel(%arg0: i32, %arg1: memref<16x128xf32, #tpu.memory_space<vmem>>, %arg2: memref<128x128xbf16, #tpu.memory_space<vmem>>, %arg3: memref<1x128xf32, #tpu.memory_space<vmem>>, %arg4: memref<128x128xbf16, #tpu.memory_space<vmem>>, %arg5: memref<1x128xf32, #tpu.memory_space<vmem>>, %arg6: memref<128x128xbf16, #tpu.memory_space<vmem>>, %arg7: memref<1x128xf32, #tpu.memory_space<vmem>>, %arg8: memref<16x128xf32, #tpu.memory_space<vmem>>) attributes {dimension_semantics = [#tpu.dimension_semantics<parallel>], iteration_bounds = array<i64: 1>, scalar_prefetch = 0 : i64, scratch_operands = 0 : i64, tpu.core_type = #tpu.core_type<tc>, window_params = [{transform_indices = @transform_0, window_bounds = array<i64: 16, 128>}, {pipeline_mode = #tpu.pipeline_mode<synchronous>, transform_indices = @transform_1, window_bounds = array<i64: 128, 128>}, {pipeline_mode = #tpu.pipeline_mode<synchronous>, transform_indices = @transform_2, window_bounds = array<i64: 1, 128>}, {pipeline_mode = #tpu.pipeline_mode<synchronous>, transform_indices = @transform_3, window_bounds = array<i64: 128, 128>}, {pipeline_mode = #tpu.pipeline_mode<synchronous>, transform_indices = @transform_4, window_bounds = array<i64: 1, 128>}, {pipeline_mode = #tpu.pipeline_mode<synchronous>, transform_indices = @transform_5, window_bounds = array<i64: 128, 128>}, {pipeline_mode = #tpu.pipeline_mode<synchronous>, transform_indices = @transform_6, window_bounds = array<i64: 1, 128>}, {transform_indices = @transform_7, window_bounds = array<i64: 16, 128>}]} {
    %c0 = arith.constant 0 : index
    %c0_0 = arith.constant 0 : index
    %0 = vector.load %arg1[%c0, %c0_0] : memref<16x128xf32, #tpu.memory_space<vmem>>, vector<16x128xf32>
    %1 = arith.truncf %0 : vector<16x128xf32> to vector<16x128xbf16>
    %c0_1 = arith.constant 0 : index
    %c0_2 = arith.constant 0 : index
    %2 = vector.load %arg2[%c0_1, %c0_2] : memref<128x128xbf16, #tpu.memory_space<vmem>>, vector<128x128xbf16>
    %cst = arith.constant dense<0.000000e+00> : vector<16x128xf32>
    %3 = tpu.matmul %1, %2, %cst {dimension_numbers = #tpu.dot_dimension_numbers<[1], [0], [0], [1], [0, 0, 1, 1], [], []>} : vector<16x128xbf16>, vector<128x128xbf16>, vector<16x128xf32> -> vector<16x128xf32>
    %c0_3 = arith.constant 0 : index
    %c0_4 = arith.constant 0 : index
    %4 = vector.load %arg3[%c0_3, %c0_4] : memref<1x128xf32, #tpu.memory_space<vmem>>, vector<1x128xf32>
    %5 = vector.broadcast %4 : vector<1x128xf32> to vector<16x128xf32>
    %6 = arith.addf %3, %5 : vector<16x128xf32>
    %cst_5 = arith.constant 0.000000e+00 : f32
    %7 = vector.broadcast %cst_5 : f32 to vector<16x128xf32>
    %8 = arith.maximumf %6, %7 : vector<16x128xf32>
    %9 = arith.truncf %8 : vector<16x128xf32> to vector<16x128xbf16>
    %c0_6 = arith.constant 0 : index
    %c0_7 = arith.constant 0 : index
    %10 = vector.load %arg4[%c0_6, %c0_7] : memref<128x128xbf16, #tpu.memory_space<vmem>>, vector<128x128xbf16>
    %cst_8 = arith.constant dense<0.000000e+00> : vector<16x128xf32>
    %11 = tpu.matmul %9, %10, %cst_8 {dimension_numbers = #tpu.dot_dimension_numbers<[1], [0], [0], [1], [0, 0, 1, 1], [], []>} : vector<16x128xbf16>, vector<128x128xbf16>, vector<16x128xf32> -> vector<16x128xf32>
    %c0_9 = arith.constant 0 : index
    %c0_10 = arith.constant 0 : index
    %12 = vector.load %arg5[%c0_9, %c0_10] : memref<1x128xf32, #tpu.memory_space<vmem>>, vector<1x128xf32>
    %13 = vector.broadcast %12 : vector<1x128xf32> to vector<16x128xf32>
    %14 = arith.addf %11, %13 : vector<16x128xf32>
    %cst_11 = arith.constant 0.000000e+00 : f32
    %15 = vector.broadcast %cst_11 : f32 to vector<16x128xf32>
    %16 = arith.maximumf %14, %15 : vector<16x128xf32>
    %17 = arith.addf %16, %8 : vector<16x128xf32>
    %18 = arith.truncf %17 : vector<16x128xf32> to vector<16x128xbf16>
    %c0_12 = arith.constant 0 : index
    %c0_13 = arith.constant 0 : index
    %19 = vector.load %arg6[%c0_12, %c0_13] : memref<128x128xbf16, #tpu.memory_space<vmem>>, vector<128x128xbf16>
    %cst_14 = arith.constant dense<0.000000e+00> : vector<16x128xf32>
    %20 = tpu.matmul %18, %19, %cst_14 {dimension_numbers = #tpu.dot_dimension_numbers<[1], [0], [0], [1], [0, 0, 1, 1], [], []>} : vector<16x128xbf16>, vector<128x128xbf16>, vector<16x128xf32> -> vector<16x128xf32>
    %c0_15 = arith.constant 0 : index
    %c0_16 = arith.constant 0 : index
    %21 = vector.load %arg7[%c0_15, %c0_16] : memref<1x128xf32, #tpu.memory_space<vmem>>, vector<1x128xf32>
    %22 = vector.broadcast %21 : vector<1x128xf32> to vector<16x128xf32>
    %23 = arith.addf %20, %22 : vector<16x128xf32>
    %c0_17 = arith.constant 0 : index
    %c0_18 = arith.constant 0 : index
    %24 = vector.load %arg8[%c0_17, %c0_18] : memref<16x128xf32, #tpu.memory_space<vmem>>, vector<16x128xf32>
    tpu.vector_store %arg8[%c0_17, %c0_18], %23 {strides = array<i32>} : memref<16x128xf32, #tpu.memory_space<vmem>>, vector<16x128xf32>,
    return
  }
  func.func @transform_0(%arg0: i32) -> (i32, i32) {
    %c0_i32 = arith.constant 0 : i32
    %c0_i32_0 = arith.constant 0 : i32
    return %arg0, %c0_i32 : i32, i32
  }
  func.func @transform_1(%arg0: i32) -> (i32, i32) {
    %c0_i32 = arith.constant 0 : i32
    %c0_i32_0 = arith.constant 0 : i32
    %c0_i32_1 = arith.constant 0 : i32
    return %c0_i32, %c0_i32_0 : i32, i32
  }
  func.func @transform_2(%arg0: i32) -> (i32, i32) {
    %c0_i32 = arith.constant 0 : i32
    %c0_i32_0 = arith.constant 0 : i32
    %c0_i32_1 = arith.constant 0 : i32
    return %c0_i32, %c0_i32_0 : i32, i32
  }
  func.func @transform_3(%arg0: i32) -> (i32, i32) {
    %c0_i32 = arith.constant 0 : i32
    %c0_i32_0 = arith.constant 0 : i32
    %c0_i32_1 = arith.constant 0 : i32
    return %c0_i32, %c0_i32_0 : i32, i32
  }
  func.func @transform_4(%arg0: i32) -> (i32, i32) {
    %c0_i32 = arith.constant 0 : i32
    %c0_i32_0 = arith.constant 0 : i32
    %c0_i32_1 = arith.constant 0 : i32
    return %c0_i32, %c0_i32_0 : i32, i32
  }
  func.func @transform_5(%arg0: i32) -> (i32, i32) {
    %c0_i32 = arith.constant 0 : i32
    %c0_i32_0 = arith.constant 0 : i32
    %c0_i32_1 = arith.constant 0 : i32
    return %c0_i32, %c0_i32_0 : i32, i32
  }
  func.func @transform_6(%arg0: i32) -> (i32, i32) {
    %c0_i32 = arith.constant 0 : i32
    %c0_i32_0 = arith.constant 0 : i32
    %c0_i32_1 = arith.constant 0 : i32
    return %c0_i32, %c0_i32_0 : i32, i32
  }
  func.func @transform_7(%arg0: i32) -> (i32, i32) {
    %c0_i32 = arith.constant 0 : i32
    %c0_i32_0 = arith.constant 0 : i32
    return %arg0, %c0_i32 : i32, i32
  }
}

</mosaic_0001>

<bundles_post_ra>
// kernel: tpu_custom_call.1
= control target key start
LH: loop header
LB: loop body
LE: loop exit
PB: predicated region body
PF: predicated region fallthrough
CT: control target
= control target key end

     0   :  { %12 = vsyncpa [#allocation3], 0  ;;  %s890_s0 = inlined_call_operand.hbm [shape: f32[16,128], index: 0, kind: input, shape index: {}]   ;;  %s891_s1 = inlined_call_operand.hbm [shape: bf16[128,128], index: 1, kind: input, shape index: {}]   ;;  %s892_s2 = inlined_call_operand.vmem [shape: f32[1,128], index: 2, kind: input, shape index: {}]   ;;  %s893_s3 = inlined_call_operand.hbm [shape: bf16[128,128], index: 3, kind: input, shape index: {}]   ;;  %s894_s4 = inlined_call_operand.vmem [shape: f32[1,128], index: 4, kind: input, shape index: {}]   ;;  %s895_s5 = inlined_call_operand.hbm [shape: bf16[128,128], index: 5, kind: input, shape index: {}]   ;;  %s896_s6 = inlined_call_operand.vmem [shape: f32[1,128], index: 6, kind: input, shape index: {}]   ;;  %s897_s7 = inlined_call_operand.hbm [shape: f32[16,128], index: 7, kind: output, shape index: {}]  }
   0x1   :  { %13 = vsyncpa [#allocation6], 0 }
   0x2   :  { %14 = vsyncpa [#allocation9], 0 }
   0x3   :  { %15 = vsyncpa [#allocation4], 0  ;;  %s718_s24 = smov [#allocation5]   ;;  %s600_s28 = scalar_lea.hbm %s891_s1, 1024 }
   0x4   :  { %s33_s25 = sshll.u32 %s718_s24, 4  ;;  %p601_p0 = scmp.ne.s32.totalorder %s891_s1, %s600_s28  ;;  %s34_s25 = int_to_ptr.vmem [resolvable:$true] %s33_s25 }
   0x5   :  { %p604_p1 = scmp.lt.u32.totalorder %s600_s28, %s891_s1 }
   0x7   :  { %p606_p2 = pnand %p604_p1, %p601_p0 }
   0x9   :  { %609 = shalt.err (!%p606_p2)
}
   0xa   :  { %s610_s10 = scalar_lea.vmem %s34_s25, 1024  ;;  %p615_p4 = scmp.lt.s32.totalorder %s34_s25, %s34_s25 }
   0xb   :  { %p611_p3 = scmp.ne.s32.totalorder %s34_s25, %s610_s10  ;;  %p616_p5 = scmp.lt.s32.totalorder %s610_s10, %s610_s10 }
   0xd   :  { %p617_p6 = por %p616_p5, %p615_p4 }
   0xf   :  { %p618_p7 = pnand %p617_p6, %p611_p3 }
  0x11   :  { %621 = shalt.err (!%p618_p7)
}
  0x12   :  { %s719_s11 = smov 64   ;;  %s720_s12 = smov 4  }
  0x13   :  { %39 = dma.hbm_to_vmem [thread:$0]  %s891_s1, 1024, %s34_s25, [#allocation6], %s719_s11, %s719_s11, %s720_s12  }
  0x14   :  { %s721_s15 = smov [#allocation2]   ;;  %s622_s19 = scalar_lea.hbm %s890_s0, 256 }
  0x15   :  { %s21_s16 = sshll.u32 %s721_s15, 4  ;;  %p623_p8 = scmp.ne.s32.totalorder %s890_s0, %s622_s19  ;;  %s22_s16 = int_to_ptr.vmem [resolvable:$true] %s21_s16 }
  0x16   :  { %p626_p9 = scmp.lt.u32.totalorder %s622_s19, %s890_s0 }
  0x18   :  { %p628_p10 = pnand %p626_p9, %p623_p8 }
  0x1a   :  { %631 = shalt.err (!%p628_p10)
}
  0x1b   :  { %s632_s24 = scalar_lea.vmem %s22_s16, 256  ;;  %p637_p12 = scmp.lt.s32.totalorder %s22_s16, %s22_s16 }
  0x1c   :  { %p633_p11 = scmp.ne.s32.totalorder %s22_s16, %s632_s24  ;;  %p638_p13 = scmp.lt.s32.totalorder %s632_s24, %s632_s24 }
  0x1e   :  { %p639_p0 = por %p638_p13, %p637_p12 }
  0x20   :  { %p640_p1 = pnand %p639_p0, %p633_p11 }
  0x22   :  { %643 = shalt.err (!%p640_p1)
}
  0x23   :  { %s722_s1 = smov 128   ;;  %s723_s25 = smov 8  }
  0x24   :  { %27 = dma.hbm_to_vmem [thread:$0]  %s890_s0, 256, %s22_s16, [#allocation3], %s722_s1, %s722_s1, %s723_s25  }
  0x25   :  { %s724_s28 = smov [#allocation7]   ;;  %s725_s30 = smov [#allocation8]  }
  0x26   :  { %s47_s29 = sshll.u32 %s724_s28, 4  ;;  %s61_s8 = sshll.u32 %s725_s30, 4  ;;  %s48_s29 = int_to_ptr.vmem [resolvable:$true] %s47_s29  ;;  %s799_s8 = int_to_ptr.vmem [resolvable:$true] %s61_s8 }
  0x27   :  { %s644_s13 = scalar_lea.hbm %s893_s3, 1024 }
  0x28   :  { %p645_p2 = scmp.ne.s32.totalorder %s893_s3, %s644_s13  ;;  %p648_p3 = scmp.lt.u32.totalorder %s644_s13, %s893_s3 }
  0x2a   :  { %p650_p4 = pnand %p648_p3, %p645_p2 }
  0x2c   :  { %653 = shalt.err (!%p650_p4)
}
  0x2d   :  { %s654_s0 = scalar_lea.vmem %s48_s29, 1024  ;;  %p659_p6 = scmp.lt.s32.totalorder %s48_s29, %s48_s29 }
  0x2e   :  { %p655_p5 = scmp.ne.s32.totalorder %s48_s29, %s654_s0  ;;  %p660_p7 = scmp.lt.s32.totalorder %s654_s0, %s654_s0 }
  0x30   :  { %p661_p8 = por %p660_p7, %p659_p6 }
  0x32   :  { %p662_p9 = pnand %p661_p8, %p655_p5 }
  0x34   :  { %665 = shalt.err (!%p662_p9)
}
  0x35   :  { %53 = dma.hbm_to_vmem [thread:$0]  %s893_s3, 1024, %s48_s29, [#allocation6], %s719_s11, %s719_s11, %s720_s12  }
  0x36   :  { %s666_s22 = scalar_lea.hbm %s895_s5, 1024 }
  0x37   :  { %p667_p10 = scmp.ne.s32.totalorder %s895_s5, %s666_s22  ;;  %p670_p11 = scmp.lt.u32.totalorder %s666_s22, %s895_s5 }
  0x39   :  { %p672_p12 = pnand %p670_p11, %p667_p10 }
  0x3b   :  { %675 = shalt.err (!%p672_p12)
}
  0x3c   :  { %s676_s28 = scalar_lea.vmem %s799_s8, 1024  ;;  %p681_p0 = scmp.lt.s32.totalorder %s799_s8, %s799_s8 }
  0x3d   :  { %p677_p13 = scmp.ne.s32.totalorder %s799_s8, %s676_s28  ;;  %p682_p1 = scmp.lt.s32.totalorder %s676_s28, %s676_s28 }
  0x3f   :  { %p683_p2 = por %p682_p1, %p681_p0 }
  0x41   :  { %p684_p3 = pnand %p683_p2, %p677_p13 }
  0x43   :  { %687 = shalt.err (!%p684_p3)
}
  0x44   :  { %67 = dma.hbm_to_vmem [thread:$0]  %s895_s5, 1024, %s799_s8, [#allocation9], %s719_s11, %s719_s11, %s720_s12  }
  0x45   :  { %710 = dma.done.wait [#allocation3], 256  }
  0x46   :  { %711 = vsyncadd [#allocation3], 4294967040 }
  0x47   :  { %712 = dma.done.wait [#allocation6], 2048  }
  0x48   :  { %713 = vsyncadd [#allocation6], 4294965248 }
  0x49   :  { %714 = dma.done.wait [#allocation9], 1024  }
  0x4a   :  { %715 = vsyncadd [#allocation9], 4294966272  ;;  %v726_v0 = vmov 0.0   ;;  %vm727_vm0 = vmmov 0   ;;  %v576_v1 = vld [vmem:[#allocation5] sm:$0xff]   ;;  %v577_v2 = vld [vmem:[#allocation5 + $0x8] sm:$0xff]  }
  0x4b   :  { %505 = vmatprep.subr.bf16.mxu0 %v726_v0  ;;  %521 = vmatprep.mubr.msk.bf16.mxu0 %vm727_vm0, %v726_v0  ;;  %v578_v3 = vld [vmem:[#allocation5 + $0x10] sm:$0xff]   ;;  %v584_v4 = vld [vmem:[#allocation7] sm:$0xff]   ;;  %v579_v5 = vld [vmem:[#allocation5 + $0x18] sm:$0xff]   ;;  %s728_s9 = smov [#allocation10]  }
  0x4c   :  { %525 = vmatprep.subr.bf16.mxu1 %v726_v0  ;;  %541 = vmatprep.mubr.msk.bf16.mxu1 %vm727_vm0, %v726_v0  ;;  %v585_v6 = vld [vmem:[#allocation7 + $0x8] sm:$0xff]   ;;  %v580_v7 = vld [vmem:[#allocation5 + $0x20] sm:$0xff]   ;;  %v586_v8 = vld [vmem:[#allocation7 + $0x10] sm:$0xff]   ;;  %s437_s10 = sshll.u32 %s728_s9, 4  ;;  %s438_s10 = int_to_ptr.vmem [resolvable:$true] %s437_s10 }
  0x4d   :  { %506 = vmatpush3.bf16.msra.mxu0 %v576_v1  ;;  %526 = vmatpush3.bf16.msra.mxu1 %v584_v4  ;;  %v581_v9 = vld [vmem:[#allocation5 + $0x28] sm:$0xff]   ;;  %v587_v10 = vld [vmem:[#allocation7 + $0x18] sm:$0xff]   ;;  %v582_v11 = vld [vmem:[#allocation5 + $0x30] sm:$0xff]   ;;  %p693_p5 = scmp.lt.s32.totalorder %s438_s10, %s438_s10 }
  0x4e   :  { %507 = vmatprep.subr.bf16.mxu0 %v726_v0  ;;  %527 = vmatprep.subr.bf16.mxu1 %v726_v0  ;;  %v588_v12 = vld [vmem:[#allocation7 + $0x20] sm:$0xff]   ;;  %v583_v13 = vld [vmem:[#allocation5 + $0x38] sm:$0xff]   ;;  %v83_v14 = vld [vmem:[#allocation2] sm:$0xff] }
  0x4f   :  { %v84_v15 = vld [vmem:[#allocation2 + $0x8] sm:$0xff]  ;;  %v589_v16 = vld [vmem:[#allocation7 + $0x28] sm:$0xff]   ;;  %v590_v18 = vld [vmem:[#allocation7 + $0x30] sm:$0xff]  }
  0x50   :  { %v85_v17 = vpack.c.bf16 %v84_v15, %v83_v14  ;;  %v591_v19 = vld [vmem:[#allocation7 + $0x38] sm:$0xff]   ;;  %v592_v20 = vld [vmem:[#allocation8] sm:$0xff]   ;;  %v593_v21 = vld [vmem:[#allocation8 + $0x8] sm:$0xff]  }
  0x51   :  { %508 = vmatpush3.bf16.msra.mxu0 %v577_v2  ;;  %528 = vmatpush3.bf16.msra.mxu1 %v585_v6  ;;  %v594_v22 = vld [vmem:[#allocation8 + $0x10] sm:$0xff]   ;;  %v595_v23 = vld [vmem:[#allocation8 + $0x18] sm:$0xff]   ;;  %v596_v24 = vld [vmem:[#allocation8 + $0x20] sm:$0xff]  }
  0x52   :  { %509 = vmatprep.subr.bf16.mxu0 %v726_v0  ;;  %529 = vmatprep.subr.bf16.mxu1 %v726_v0  ;;  %v451_v25 = vld [vmem:[%s892_s2] ss:$0 sm:$0xff]  ;;  %v597_v35 = vld [vmem:[#allocation8 + $0x28] sm:$0xff]   ;;  %v599_v37 = vld [vmem:[#allocation8 + $0x38] sm:$0xff]  }
  0x53   :  { %v598_v36 = vld [vmem:[#allocation8 + $0x30] sm:$0xff]  }
  0x54   :  { %v460_v38 = vld [vmem:[%s894_s4] ss:$0 sm:$0xff]  ;;  %s688_s4 = scalar_lea.vmem %s438_s10, 256 }
  0x55   :  { %510 = vmatpush3.bf16.msra.mxu0 %v578_v3  ;;  %530 = vmatpush3.bf16.msra.mxu1 %v586_v8  ;;  %v469_v50 = vld [vmem:[%s896_s6] ss:$0 sm:$0xff]  ;;  %p689_p4 = scmp.ne.s32.totalorder %s438_s10, %s688_s4  ;;  %p694_p6 = scmp.lt.s32.totalorder %s688_s4, %s688_s4 }
  0x56   :  { %511 = vmatprep.subr.bf16.mxu0 %v726_v0  ;;  %531 = vmatprep.subr.bf16.mxu1 %v726_v0 }
  0x57   :  { %p695_p7 = por %p694_p6, %p693_p5 }
  0x59   :  { %512 = vmatpush3.bf16.msra.mxu0 %v579_v5  ;;  %532 = vmatpush3.bf16.msra.mxu1 %v587_v10  ;;  %p696_p8 = pnand %p695_p7, %p689_p4 }
  0x5a   :  { %513 = vmatprep.subr.bf16.mxu0 %v726_v0  ;;  %533 = vmatprep.subr.bf16.mxu1 %v726_v0 }
  0x5d   :  { %514 = vmatpush3.bf16.msra.mxu0 %v580_v7  ;;  %534 = vmatpush3.bf16.msra.mxu1 %v588_v12 }
  0x5e   :  { %515 = vmatprep.subr.bf16.mxu0 %v726_v0  ;;  %535 = vmatprep.subr.bf16.mxu1 %v726_v0 }
  0x61   :  { %516 = vmatpush3.bf16.msra.mxu0 %v581_v9  ;;  %536 = vmatpush3.bf16.msra.mxu1 %v589_v16 }
  0x62   :  { %517 = vmatprep.subr.bf16.mxu0 %v726_v0  ;;  %537 = vmatprep.subr.bf16.mxu1 %v726_v0 }
  0x65   :  { %518 = vmatpush3.bf16.msra.mxu0 %v582_v11  ;;  %538 = vmatpush3.bf16.msra.mxu1 %v590_v18 }
  0x66   :  { %519 = vmatprep.subr.bf16.mxu0 %v726_v0  ;;  %539 = vmatprep.subr.bf16.mxu1 %v726_v0 }
  0x69   :  { %520 = vmatpush3.bf16.msra.mxu0 %v583_v13  ;;  %540 = vmatpush3.bf16.msra.mxu1 %v591_v19 }
  0x6a   :  { %545 = vmatprep.subr.bf16.mxu0 %v726_v0 }
  0x6c   :  { %522 = vmatmul.mubr.bf16.vlgmr.msra.gmra.mrb[0].mxu0 %v85_v17 }
  0x6d   :  { %561 = vmatprep.mubr.msk.bf16.mxu0 %vm727_vm0, %v726_v0  ;;  %546 = vmatpush3.bf16.msra.mxu0 %v592_v20 }
  0x6e   :  { %547 = vmatprep.subr.bf16.mxu0 %v726_v0 }
  0x71   :  { %548 = vmatpush3.bf16.msra.mxu0 %v593_v21 }
  0x72   :  { %549 = vmatprep.subr.bf16.mxu0 %v726_v0 }
  0x75   :  { %550 = vmatpush3.bf16.msra.mxu0 %v594_v22 }
  0x76   :  { %551 = vmatprep.subr.bf16.mxu0 %v726_v0 }
  0x79   :  { %552 = vmatpush3.bf16.msra.mxu0 %v595_v23 }
  0x7a   :  { %553 = vmatprep.subr.bf16.mxu0 %v726_v0 }
  0x7d   :  { %554 = vmatpush3.bf16.msra.mxu0 %v596_v24 }
  0x7e   :  { %555 = vmatprep.subr.bf16.mxu0 %v726_v0 }
  0x81   :  { %556 = vmatpush3.bf16.msra.mxu0 %v597_v35 }
  0x82   :  { %557 = vmatprep.subr.bf16.mxu0 %v726_v0 }
  0x85   :  { %558 = vmatpush3.bf16.msra.mxu0 %v598_v36 }
  0x86   :  { %559 = vmatprep.subr.bf16.mxu0 %v726_v0 }
  0x89   :  { %560 = vmatpush3.bf16.msra.mxu0 %v599_v37 }
 0x13f   :  { %v191_v26 = vpop.f32.mrb[0].mxu0 }
 0x140   :  { %v192_v27 = vadd.f32 %v451_v25, %v191_v26  ;;  %v523_v28 = vpop.f32.mrb[1].mxu0 }
 0x141   :  { %v194_v29 = vpop.f32.mrb[2].mxu0 }
 0x142   :  { %v195_v30 = vadd.f32 %v451_v25, %v194_v29  ;;  %v524_v31 = vpop.f32.mrb[3].mxu0  ;;  %v198_v32 = vmax.f32 %v192_v27, 0.0 }
 0x144   :  { %v199_v33 = vmax.f32 %v195_v30, 0.0 }
 0x146   :  { %v200_v34 = vpack.c.bf16 %v199_v33, %v198_v32 }
 0x148   :  { %542 = vmatmul.mubr.bf16.vlgmr.msra.gmra.mrb[0].mxu1 %v200_v34 }
 0x21b   :  { %v306_v39 = vpop.f32.mrb[0].mxu1 }
 0x21c   :  { %v307_v40 = vadd.f32 %v460_v38, %v306_v39  ;;  %v543_v41 = vpop.f32.mrb[1].mxu1 }
 0x21d   :  { %v309_v42 = vpop.f32.mrb[2].mxu1 }
 0x21e   :  { %v313_v43 = vmax.f32 %v307_v40, 0.0  ;;  %v310_v44 = vadd.f32 %v460_v38, %v309_v42  ;;  %v544_v45 = vpop.f32.mrb[3].mxu1 }
 0x220   :  { %v314_v46 = vmax.f32 %v310_v44, 0.0  ;;  %v315_v47 = vadd.f32 %v313_v43, %v198_v32 }
 0x222   :  { %v316_v48 = vadd.f32 %v314_v46, %v199_v33 }
 0x224   :  { %v317_v49 = vpack.c.bf16 %v316_v48, %v315_v47 }
 0x226   :  { %562 = vmatmul.mubr.bf16.vlgmr.msra.gmra.mrb[4].mxu0 %v317_v49 }
 0x2f9   :  { %v423_v51 = vpop.f32.mrb[4].mxu0 }
 0x2fa   :  { %v424_v52 = vadd.f32 %v469_v50, %v423_v51  ;;  %v563_v53 = vpop.f32.mrb[5].mxu0 }
 0x2fb   :  { %v426_v54 = vpop.f32.mrb[6].mxu0 }
 0x2fc   :  { %430 = vst [vmem:[#allocation10] sm:$0xff] %v424_v52  ;;  %v427_v55 = vadd.f32 %v469_v50, %v426_v54  ;;  %v564_v56 = vpop.f32.mrb[7].mxu0 }
 0x2fe   :  { %431 = vst [vmem:[#allocation10 + $0x8] sm:$0xff] %v427_v55 }
 0x2ff   :  { %699 = shalt.err (!%p696_p8)
}
 0x300   :  { %s700_s14 = scalar_lea.hbm %s897_s7, 256 }
 0x301   :  { %p701_p9 = scmp.ne.s32.totalorder %s897_s7, %s700_s14  ;;  %p704_p10 = scmp.lt.u32.totalorder %s700_s14, %s897_s7 }
 0x303   :  { %p706_p11 = pnand %p704_p10, %p701_p9 }
 0x305   :  { %709 = shalt.err (!%p706_p11)
}
 0x306   :  { %443 = dma.vmem_to_hbm [thread:$0]  %s438_s10, 256, %s897_s7, [#allocation4], %s722_s1, %s722_s1, %s723_s25  }
 0x307   :  { %716 = dma.done.wait [#allocation4], 256  }
 0x308   :  { %717 = vsyncadd [#allocation4], 4294967040 }
 0x309   :  { %447 = vsyncpa [#allocation3], 1 }
 0x30a   :  { %448 = vsyncpa [#allocation6], 1 }
 0x30b   :  { %449 = vsyncpa [#allocation9], 1 }
 0x30c   :  { %450 = vsyncpa [#allocation4], 1 }

// kernel: tpu_custom_call.1
= control target key start
LH: loop header
LB: loop body
LE: loop exit
PB: predicated region body
PF: predicated region fallthrough
CT: control target
= control target key end

     0   :  { %12 = vsyncpa [#allocation3], 0  ;;  %s890_s0 = inlined_call_operand.hbm [shape: f32[16,128], index: 0, kind: input, shape index: {}]   ;;  %s891_s1 = inlined_call_operand.hbm [shape: bf16[128,128], index: 1, kind: input, shape index: {}]   ;;  %s892_s2 = inlined_call_operand.vmem [shape: f32[1,128], index: 2, kind: input, shape index: {}]   ;;  %s893_s3 = inlined_call_operand.hbm [shape: bf16[128,128], index: 3, kind: input, shape index: {}]   ;;  %s894_s4 = inlined_call_operand.vmem [shape: f32[1,128], index: 4, kind: input, shape index: {}]   ;;  %s895_s5 = inlined_call_operand.hbm [shape: bf16[128,128], index: 5, kind: input, shape index: {}]   ;;  %s896_s6 = inlined_call_operand.vmem [shape: f32[1,128], index: 6, kind: input, shape index: {}]   ;;  %s897_s7 = inlined_call_operand.hbm [shape: f32[16,128], index: 7, kind: output, shape index: {}]  }
   0x1   :  { %13 = vsyncpa [#allocation6], 0 }
   0x2   :  { %14 = vsyncpa [#allocation9], 0 }
   0x3   :  { %15 = vsyncpa [#allocation4], 0  ;;  %s718_s24 = smov [#allocation5]   ;;  %s600_s28 = scalar_lea.hbm %s891_s1, 1024 }
   0x4   :  { %s33_s25 = sshll.u32 %s718_s24, 4  ;;  %p601_p0 = scmp.ne.s32.totalorder %s891_s1, %s600_s28  ;;  %s34_s25 = int_to_ptr.vmem [resolvable:$true] %s33_s25 }
   0x5   :  { %p604_p1 = scmp.lt.u32.totalorder %s600_s28, %s891_s1 }
   0x7   :  { %p606_p2 = pnand %p604_p1, %p601_p0 }
   0x9   :  { %609 = shalt.err (!%p606_p2)
}
   0xa   :  { %s610_s10 = scalar_lea.vmem %s34_s25, 1024  ;;  %p615_p4 = scmp.lt.s32.totalorder %s34_s25, %s34_s25 }
   0xb   :  { %p611_p3 = scmp.ne.s32.totalorder %s34_s25, %s610_s10  ;;  %p616_p5 = scmp.lt.s32.totalorder %s610_s10, %s610_s10 }
   0xd   :  { %p617_p6 = por %p616_p5, %p615_p4 }
   0xf   :  { %p618_p7 = pnand %p617_p6, %p611_p3 }
  0x11   :  { %621 = shalt.err (!%p618_p7)
}
  0x12   :  { %s719_s11 = smov 64   ;;  %s720_s12 = smov 4  }
  0x13   :  { %39 = dma.hbm_to_vmem [thread:$0]  %s891_s1, 1024, %s34_s25, [#allocation6], %s719_s11, %s719_s11, %s720_s12  }
  0x14   :  { %s721_s15 = smov [#allocation2]   ;;  %s622_s19 = scalar_lea.hbm %s890_s0, 256 }
  0x15   :  { %s21_s16 = sshll.u32 %s721_s15, 4  ;;  %p623_p8 = scmp.ne.s32.totalorder %s890_s0, %s622_s19  ;;  %s22_s16 = int_to_ptr.vmem [resolvable:$true] %s21_s16 }
  0x16   :  { %p626_p9 = scmp.lt.u32.totalorder %s622_s19, %s890_s0 }
  0x18   :  { %p628_p10 = pnand %p626_p9, %p623_p8 }
  0x1a   :  { %631 = shalt.err (!%p628_p10)
}
  0x1b   :  { %s632_s24 = scalar_lea.vmem %s22_s16, 256  ;;  %p637_p12 = scmp.lt.s32.totalorder %s22_s16, %s22_s16 }
  0x1c   :  { %p633_p11 = scmp.ne.s32.totalorder %s22_s16, %s632_s24  ;;  %p638_p13 = scmp.lt.s32.totalorder %s632_s24, %s632_s24 }
  0x1e   :  { %p639_p0 = por %p638_p13, %p637_p12 }
  0x20   :  { %p640_p1 = pnand %p639_p0, %p633_p11 }
  0x22   :  { %643 = shalt.err (!%p640_p1)
}
  0x23   :  { %s722_s1 = smov 128   ;;  %s723_s25 = smov 8  }
  0x24   :  { %27 = dma.hbm_to_vmem [thread:$0]  %s890_s0, 256, %s22_s16, [#allocation3], %s722_s1, %s722_s1, %s723_s25  }
  0x25   :  { %s724_s28 = smov [#allocation7]   ;;  %s725_s30 = smov [#allocation8]  }
  0x26   :  { %s47_s29 = sshll.u32 %s724_s28, 4  ;;  %s61_s8 = sshll.u32 %s725_s30, 4  ;;  %s48_s29 = int_to_ptr.vmem [resolvable:$true] %s47_s29  ;;  %s799_s8 = int_to_ptr.vmem [resolvable:$true] %s61_s8 }
  0x27   :  { %s644_s13 = scalar_lea.hbm %s893_s3, 1024 }
  0x28   :  { %p645_p2 = scmp.ne.s32.totalorder %s893_s3, %s644_s13  ;;  %p648_p3 = scmp.lt.u32.totalorder %s644_s13, %s893_s3 }
  0x2a   :  { %p650_p4 = pnand %p648_p3, %p645_p2 }
  0x2c   :  { %653 = shalt.err (!%p650_p4)
}
  0x2d   :  { %s654_s0 = scalar_lea.vmem %s48_s29, 1024  ;;  %p659_p6 = scmp.lt.s32.totalorder %s48_s29, %s48_s29 }
  0x2e   :  { %p655_p5 = scmp.ne.s32.totalorder %s48_s29, %s654_s0  ;;  %p660_p7 = scmp.lt.s32.totalorder %s654_s0, %s654_s0 }
  0x30   :  { %p661_p8 = por %p660_p7, %p659_p6 }
  0x32   :  { %p662_p9 = pnand %p661_p8, %p655_p5 }
  0x34   :  { %665 = shalt.err (!%p662_p9)
}
  0x35   :  { %53 = dma.hbm_to_vmem [thread:$0]  %s893_s3, 1024, %s48_s29, [#allocation6], %s719_s11, %s719_s11, %s720_s12  }
  0x36   :  { %s666_s22 = scalar_lea.hbm %s895_s5, 1024 }
  0x37   :  { %p667_p10 = scmp.ne.s32.totalorder %s895_s5, %s666_s22  ;;  %p670_p11 = scmp.lt.u32.totalorder %s666_s22, %s895_s5 }
  0x39   :  { %p672_p12 = pnand %p670_p11, %p667_p10 }
  0x3b   :  { %675 = shalt.err (!%p672_p12)
}
  0x3c   :  { %s676_s28 = scalar_lea.vmem %s799_s8, 1024  ;;  %p681_p0 = scmp.lt.s32.totalorder %s799_s8, %s799_s8 }
  0x3d   :  { %p677_p13 = scmp.ne.s32.totalorder %s799_s8, %s676_s28  ;;  %p682_p1 = scmp.lt.s32.totalorder %s676_s28, %s676_s28 }
  0x3f   :  { %p683_p2 = por %p682_p1, %p681_p0 }
  0x41   :  { %p684_p3 = pnand %p683_p2, %p677_p13 }
  0x43   :  { %687 = shalt.err (!%p684_p3)
}
  0x44   :  { %67 = dma.hbm_to_vmem [thread:$0]  %s895_s5, 1024, %s799_s8, [#allocation9], %s719_s11, %s719_s11, %s720_s12  }
  0x45   :  { %710 = dma.done.wait [#allocation3], 256  }
  0x46   :  { %711 = vsyncadd [#allocation3], 4294967040 }
  0x47   :  { %712 = dma.done.wait [#allocation6], 2048  }
  0x48   :  { %713 = vsyncadd [#allocation6], 4294965248 }
  0x49   :  { %714 = dma.done.wait [#allocation9], 1024  }
  0x4a   :  { %715 = vsyncadd [#allocation9], 4294966272  ;;  %v726_v0 = vmov 0.0   ;;  %vm727_vm0 = vmmov 0   ;;  %v576_v1 = vld [vmem:[#allocation5] sm:$0xff]   ;;  %v577_v2 = vld [vmem:[#allocation5 + $0x8] sm:$0xff]  }
  0x4b   :  { %505 = vmatprep.subr.bf16.mxu0 %v726_v0  ;;  %521 = vmatprep.mubr.msk.bf16.mxu0 %vm727_vm0, %v726_v0  ;;  %v578_v3 = vld [vmem:[#allocation5 + $0x10] sm:$0xff]   ;;  %v584_v4 = vld [vmem:[#allocation7] sm:$0xff]   ;;  %v579_v5 = vld [vmem:[#allocation5 + $0x18] sm:$0xff]   ;;  %s728_s9 = smov [#allocation10]  }
  0x4c   :  { %525 = vmatprep.subr.bf16.mxu1 %v726_v0  ;;  %541 = vmatprep.mubr.msk.bf16.mxu1 %vm727_vm0, %v726_v0  ;;  %v585_v6 = vld [vmem:[#allocation7 + $0x8] sm:$0xff]   ;;  %v580_v7 = vld [vmem:[#allocation5 + $0x20] sm:$0xff]   ;;  %v586_v8 = vld [vmem:[#allocation7 + $0x10] sm:$0xff]   ;;  %s437_s10 = sshll.u32 %s728_s9, 4  ;;  %s438_s10 = int_to_ptr.vmem [resolvable:$true] %s437_s10 }
  0x4d   :  { %506 = vmatpush3.bf16.msra.mxu0 %v576_v1  ;;  %526 = vmatpush3.bf16.msra.mxu1 %v584_v4  ;;  %v581_v9 = vld [vmem:[#allocation5 + $0x28] sm:$0xff]   ;;  %v587_v10 = vld [vmem:[#allocation7 + $0x18] sm:$0xff]   ;;  %v582_v11 = vld [vmem:[#allocation5 + $0x30] sm:$0xff]   ;;  %p693_p5 = scmp.lt.s32.totalorder %s438_s10, %s438_s10 }
  0x4e   :  { %507 = vmatprep.subr.bf16.mxu0 %v726_v0  ;;  %527 = vmatprep.subr.bf16.mxu1 %v726_v0  ;;  %v588_v12 = vld [vmem:[#allocation7 + $0x20] sm:$0xff]   ;;  %v583_v13 = vld [vmem:[#allocation5 + $0x38] sm:$0xff]   ;;  %v83_v14 = vld [vmem:[#allocation2] sm:$0xff] }
  0x4f   :  { %v84_v15 = vld [vmem:[#allocation2 + $0x8] sm:$0xff]  ;;  %v589_v16 = vld [vmem:[#allocation7 + $0x28] sm:$0xff]   ;;  %v590_v18 = vld [vmem:[#allocation7 + $0x30] sm:$0xff]  }
  0x50   :  { %v85_v17 = vpack.c.bf16 %v84_v15, %v83_v14  ;;  %v591_v19 = vld [vmem:[#allocation7 + $0x38] sm:$0xff]   ;;  %v592_v20 = vld [vmem:[#allocation8] sm:$0xff]   ;;  %v593_v21 = vld [vmem:[#allocation8 + $0x8] sm:$0xff]  }
  0x51   :  { %508 = vmatpush3.bf16.msra.mxu0 %v577_v2  ;;  %528 = vmatpush3.bf16.msra.mxu1 %v585_v6  ;;  %v594_v22 = vld [vmem:[#allocation8 + $0x10] sm:$0xff]   ;;  %v595_v23 = vld [vmem:[#allocation8 + $0x18] sm:$0xff]   ;;  %v596_v24 = vld [vmem:[#allocation8 + $0x20] sm:$0xff]  }
  0x52   :  { %509 = vmatprep.subr.bf16.mxu0 %v726_v0  ;;  %529 = vmatprep.subr.bf16.mxu1 %v726_v0  ;;  %v451_v25 = vld [vmem:[%s892_s2] ss:$0 sm:$0xff]  ;;  %v597_v35 = vld [vmem:[#allocation8 + $0x28] sm:$0xff]   ;;  %v599_v37 = vld [vmem:[#allocation8 + $0x38] sm:$0xff]  }
  0x53   :  { %v598_v36 = vld [vmem:[#allocation8 + $0x30] sm:$0xff]  }
  0x54   :  { %v460_v38 = vld [vmem:[%s894_s4] ss:$0 sm:$0xff]  ;;  %s688_s4 = scalar_lea.vmem %s438_s10, 256 }
  0x55   :  { %510 = vmatpush3.bf16.msra.mxu0 %v578_v3  ;;  %530 = vmatpush3.bf16.msra.mxu1 %v586_v8  ;;  %v469_v50 = vld [vmem:[%s896_s6] ss:$0 sm:$0xff]  ;;  %p689_p4 = scmp.ne.s32.totalorder %s438_s10, %s688_s4  ;;  %p694_p6 = scmp.lt.s32.totalorder %s688_s4, %s688_s4 }
  0x56   :  { %511 = vmatprep.subr.bf16.mxu0 %v726_v0  ;;  %531 = vmatprep.subr.bf16.mxu1 %v726_v0 }
  0x57   :  { %p695_p7 = por %p694_p6, %p693_p5 }
  0x59   :  { %512 = vmatpush3.bf16.msra.mxu0 %v579_v5  ;;  %532 = vmatpush3.bf16.msra.mxu1 %v587_v10  ;;  %p696_p8 = pnand %p695_p7, %p689_p4 }
  0x5a   :  { %513 = vmatprep.subr.bf16.mxu0 %v726_v0  ;;  %533 = vmatprep.subr.bf16.mxu1 %v726_v0 }
  0x5d   :  { %514 = vmatpush3.bf16.msra.mxu0 %v580_v7  ;;  %534 = vmatpush3.bf16.msra.mxu1 %v588_v12 }
  0x5e   :  { %515 = vmatprep.subr.bf16.mxu0 %v726_v0  ;;  %535 = vmatprep.subr.bf16.mxu1 %v726_v0 }
  0x61   :  { %516 = vmatpush3.bf16.msra.mxu0 %v581_v9  ;;  %536 = vmatpush3.bf16.msra.mxu1 %v589_v16 }
  0x62   :  { %517 = vmatprep.subr.bf16.mxu0 %v726_v0  ;;  %537 = vmatprep.subr.bf16.mxu1 %v726_v0 }
  0x65   :  { %518 = vmatpush3.bf16.msra.mxu0 %v582_v11  ;;  %538 = vmatpush3.bf16.msra.mxu1 %v590_v18 }
  0x66   :  { %519 = vmatprep.subr.bf16.mxu0 %v726_v0  ;;  %539 = vmatprep.subr.bf16.mxu1 %v726_v0 }
  0x69   :  { %520 = vmatpush3.bf16.msra.mxu0 %v583_v13  ;;  %540 = vmatpush3.bf16.msra.mxu1 %v591_v19 }
  0x6a   :  { %545 = vmatprep.subr.bf16.mxu0 %v726_v0 }
  0x6c   :  { %522 = vmatmul.mubr.bf16.vlgmr.msra.gmra.mrb[0].mxu0 %v85_v17 }
  0x6d   :  { %561 = vmatprep.mubr.msk.bf16.mxu0 %vm727_vm0, %v726_v0  ;;  %546 = vmatpush3.bf16.msra.mxu0 %v592_v20 }
  0x6e   :  { %547 = vmatprep.subr.bf16.mxu0 %v726_v0 }
  0x71   :  { %548 = vmatpush3.bf16.msra.mxu0 %v593_v21 }
  0x72   :  { %549 = vmatprep.subr.bf16.mxu0 %v726_v0 }
  0x75   :  { %550 = vmatpush3.bf16.msra.mxu0 %v594_v22 }
  0x76   :  { %551 = vmatprep.subr.bf16.mxu0 %v726_v0 }
  0x79   :  { %552 = vmatpush3.bf16.msra.mxu0 %v595_v23 }
  0x7a   :  { %553 = vmatprep.subr.bf16.mxu0 %v726_v0 }
  0x7d   :  { %554 = vmatpush3.bf16.msra.mxu0 %v596_v24 }
  0x7e   :  { %555 = vmatprep.subr.bf16.mxu0 %v726_v0 }
  0x81   :  { %556 = vmatpush3.bf16.msra.mxu0 %v597_v35 }
  0x82   :  { %557 = vmatprep.subr.bf16.mxu0 %v726_v0 }
  0x85   :  { %558 = vmatpush3.bf16.msra.mxu0 %v598_v36 }
  0x86   :  { %559 = vmatprep.subr.bf16.mxu0 %v726_v0 }
  0x89   :  { %560 = vmatpush3.bf16.msra.mxu0 %v599_v37 }
 0x13f   :  { %v191_v26 = vpop.f32.mrb[0].mxu0 }
 0x140   :  { %v192_v27 = vadd.f32 %v451_v25, %v191_v26  ;;  %v523_v28 = vpop.f32.mrb[1].mxu0 }
 0x141   :  { %v194_v29 = vpop.f32.mrb[2].mxu0 }
 0x142   :  { %v195_v30 = vadd.f32 %v451_v25, %v194_v29  ;;  %v524_v31 = vpop.f32.mrb[3].mxu0  ;;  %v198_v32 = vmax.f32 %v192_v27, 0.0 }
 0x144   :  { %v199_v33 = vmax.f32 %v195_v30, 0.0 }
 0x146   :  { %v200_v34 = vpack.c.bf16 %v199_v33, %v198_v32 }
 0x148   :  { %542 = vmatmul.mubr.bf16.vlgmr.msra.gmra.mrb[0].mxu1 %v200_v34 }
 0x21b   :  { %v306_v39 = vpop.f32.mrb[0].mxu1 }
 0x21c   :  { %v307_v40 = vadd.f32 %v460_v38, %v306_v39  ;;  %v543_v41 = vpop.f32.mrb[1].mxu1 }
 0x21d   :  { %v309_v42 = vpop.f32.mrb[2].mxu1 }
 0x21e   :  { %v313_v43 = vmax.f32 %v307_v40, 0.0  ;;  %v310_v44 = vadd.f32 %v460_v38, %v309_v42  ;;  %v544_v45 = vpop.f32.mrb[3].mxu1 }
 0x220   :  { %v314_v46 = vmax.f32 %v310_v44, 0.0  ;;  %v315_v47 = vadd.f32 %v313_v43, %v198_v32 }
 0x222   :  { %v316_v48 = vadd.f32 %v314_v46, %v199_v33 }
 0x224   :  { %v317_v49 = vpack.c.bf16 %v316_v48, %v315_v47 }
 0x226   :  { %562 = vmatmul.mubr.bf16.vlgmr.msra.gmra.mrb[4].mxu0 %v317_v49 }
 0x2f9   :  { %v423_v51 = vpop.f32.mrb[4].mxu0 }
 0x2fa   :  { %v424_v52 = vadd.f32 %v469_v50, %v423_v51  ;;  %v563_v53 = vpop.f32.mrb[5].mxu0 }
 0x2fb   :  { %v426_v54 = vpop.f32.mrb[6].mxu0 }
 0x2fc   :  { %430 = vst [vmem:[#allocation10] sm:$0xff] %v424_v52  ;;  %v427_v55 = vadd.f32 %v469_v50, %v426_v54  ;;  %v564_v56 = vpop.f32.mrb[7].mxu0 }
 0x2fe   :  { %431 = vst [vmem:[#allocation10 + $0x8] sm:$0xff] %v427_v55 }
 0x2ff   :  { %699 = shalt.err (!%p696_p8)
}
 0x300   :  { %s700_s14 = scalar_lea.hbm %s897_s7, 256 }
 0x301   :  { %p701_p9 = scmp.ne.s32.totalorder %s897_s7, %s700_s14  ;;  %p704_p10 = scmp.lt.u32.totalorder %s700_s14, %s897_s7 }
 0x303   :  { %p706_p11 = pnand %p704_p10, %p701_p9 }
 0x305   :  { %709 = shalt.err (!%p706_p11)
}
 0x306   :  { %443 = dma.vmem_to_hbm [thread:$0]  %s438_s10, 256, %s897_s7, [#allocation4], %s722_s1, %s722_s1, %s723_s25  }
 0x307   :  { %716 = dma.done.wait [#allocation4], 256  }
 0x308   :  { %717 = vsyncadd [#allocation4], 4294967040 }
 0x309   :  { %447 = vsyncpa [#allocation3], 1 }
 0x30a   :  { %448 = vsyncpa [#allocation6], 1 }
 0x30b   :  { %449 = vsyncpa [#allocation9], 1 }
 0x30c   :  { %450 = vsyncpa [#allocation4], 1 }

</bundles_post_ra>
